<compile_context>
chip_gen: v6e
topology: v6e:2x2x1
jax: 0.10.0
libtpu: 0.0.40
codegen_flags: <defaults>
</compile_context>

<pallas_src>
import jax
import jax.numpy as jnp
from jax.experimental import pallas as pl
from jax.experimental.pallas import tpu as pltpu


def _round_up(v, m):
    return ((v + m - 1) // m) * m


def _ns_fnn_kernel(x_ref, inv_den_ref, c2i_ref, frs_add_ref,
                   w2_ref, cons_add_ref, expand_ref, collapse_ref, out_ref):
    x = x_ref[...].astype(jnp.float32)                                   # [TB, D]

    # ---- firing strengths: two accumulated MXU pushes (no lane-axis concat) ----
    #   log_frs[b,r] = ampli - sum_d (x-c)^2/denom
    #               = frs_add[r] - (x*x)@inv_den + x@(2*c*inv_den)
    # (frs_add already carries ampli - sum_d c^2/denom and the log rule-mask.)
    log_frs = (frs_add_ref[...]
               - jnp.dot(x * x, inv_den_ref[...],
                         preferred_element_type=jnp.float32)
               + jnp.dot(x, c2i_ref[...],
                         preferred_element_type=jnp.float32))            # [TB, R]
    raw_frs = jnp.exp(log_frs)                                           # [TB, R]

    # defuzzy='norm': EUP approx reciprocal + one Newton-Raphson refinement
    # (keeps the divide off the VPU; residual error ~eps^2).
    s = jnp.sum(raw_frs, axis=-1, keepdims=True) + 1e-10                 # [TB, 1]
    inv = pl.reciprocal(s, approx=True)
    inv = inv * (2.0 - s * inv)                                          # NR step
    frs = raw_frs * inv                                                  # [TB, R]

    # ---- consequent: single lane-dense matmul over the fused [D, R*C] slab ----
    # BN affine and rule biases are pre-folded into w2 / cons_add in the wrapper.
    cons = jnp.dot(x.astype(w2_ref.dtype), w2_ref[...],
                   preferred_element_type=jnp.float32) + cons_add_ref[...]  # [TB, R*C]

    # Lane-dense rule collapse via constant 0/1 matmuls (no [TB,R,C] intermediate).
    frs_rep = jnp.dot(frs, expand_ref[...],
                      preferred_element_type=jnp.float32)                # [TB, R*C]
    out = jnp.dot(frs_rep * cons, collapse_ref[...],
                  preferred_element_type=jnp.float32)                    # [TB, C]
    # TODO(synk): if profiling shows the narrow [TB, C<128] store epilogue on the
    # critical path, emit a lane-dense transposed output instead (measured-only opt).
    out_ref[...] = out.astype(out_ref.dtype)


def non_singleton_fnn_forward(x, centers, sigmas, ns_sigma, rule_masks,
                              bn_gamma, bn_beta, weights, biases,
                              *, ampli=0.0, bn_eps=1e-5, block_b=1024,
                              mxu_bf16=False):
    """NonSingletonFNN forward (defuzzy='norm', ravel_out=False), training-mode BN.

    TODO(synk): eval-mode BatchNorm (running stats) is supported by passing the
    running mean/var in place of the batch statistics below.
    """
    x = x.astype(jnp.float32)
    B, D = x.shape
    R = centers.shape[1]
    C = weights.shape[-1]

    # ---- one-time parameter preprocessing (plain JAX, all tiny) ----
    inv_denom = 1.0 / (2.0 * sigmas * sigmas + ns_sigma * ns_sigma)       # [D, R]
    c2i = 2.0 * centers * inv_denom                                       # [D, R]
    log_mask = jnp.where(rule_masks.reshape(1, R) > 0, 0.0, -1e30)
    frs_add = (ampli
               - jnp.sum(centers * centers * inv_denom, axis=0, keepdims=True)
               + log_mask).astype(jnp.float32)                            # [1, R]

    # BatchNorm1d (training-mode) batch statistics: single fused pass over x.
    mean = jnp.mean(x, axis=0, keepdims=True)                             # [1, D]
    var = jnp.mean(x * x, axis=0, keepdims=True) - mean * mean            # biased, as torch
    bn_scale = bn_gamma.reshape(1, D) * jax.lax.rsqrt(var + bn_eps)       # [1, D]
    bn_shift = bn_beta.reshape(1, D) - mean * bn_scale                    # [1, D]

    # Fused lane-dense consequent slab with BN affine + biases folded in.
    w2 = jnp.transpose(weights, (1, 0, 2)).reshape(D, R * C)              # [D, R*C]
    w2s = bn_scale.reshape(D, 1) * w2                                     # scale rows
    cons_add = (jnp.dot(bn_shift, w2, precision=jax.lax.Precision.HIGHEST)
                + biases.reshape(1, R * C)).astype(jnp.float32)           # [1, R*C]
    w2s = w2s.astype(jnp.bfloat16 if mxu_bf16 else jnp.float32)

    # Constant 0/1 expand / collapse matrices (hoisted out of the kernel).
    col_rule = jax.lax.broadcasted_iota(jnp.int32, (R, R * C), 1) // C
    row_rule = jax.lax.broadcasted_iota(jnp.int32, (R, R * C), 0)
    expand = (col_rule == row_rule).astype(jnp.float32)                   # [R, R*C]
    row_cls = jax.lax.broadcasted_iota(jnp.int32, (R * C, C), 0) % C
    col_cls = jax.lax.broadcasted_iota(jnp.int32, (R * C, C), 1)
    collapse = (row_cls == col_cls).astype(jnp.float32)                   # [R*C, C]

    # ---- batch tiling: no padded copy of x; ragged tails handled by block masking.
    tb = _round_up(max(1, min(int(block_b), B)), 8)
    if B >= 16 and tb >= B:
        # give the grid >=2 steps so dimension_semantics=("parallel",) can use
        # both v7x TensorCores.
        tb = _round_up((B + 1) // 2, 8)
    grid_b = (B + tb - 1) // tb

    # Rough per-step VMEM budget -> explicit scoped-VMEM limit (v5e default 16 MiB).
    param_f32 = (2 * D * R + R + D * R * C + R * C + R * R * C + R * C * C)
    per_row_f32 = 4 * (D + C) + (2 * D + 3 * R + 3 * R * C + C)
    vmem_est = 4 * (tb * per_row_f32 + 2 * param_f32)
    vmem_limit = int(min(max(2 * vmem_est, 32 << 20), 48 << 20))

    out = pl.pallas_call(
        _ns_fnn_kernel,
        out_shape=jax.ShapeDtypeStruct((B, C), jnp.float32),
        grid=(grid_b,),
        in_specs=[
            pl.BlockSpec((tb, D), lambda i: (i, 0)),        # x rows (batch-tiled)
            pl.BlockSpec((D, R), lambda i: (0, 0)),         # 1/(2σ²+σ_ns²)
            pl.BlockSpec((D, R), lambda i: (0, 0)),         # 2·c·inv_denom
            pl.BlockSpec((1, R), lambda i: (0, 0)),         # ampli - Σc²/denom + log-mask
            pl.BlockSpec((D, R * C), lambda i: (0, 0)),     # fused consequent weights (BN-folded)
            pl.BlockSpec((1, R * C), lambda i: (0, 0)),     # folded shift·W + biases
            pl.BlockSpec((R, R * C), lambda i: (0, 0)),     # constant expand
            pl.BlockSpec((R * C, C), lambda i: (0, 0)),     # constant collapse
        ],
        out_specs=pl.BlockSpec((tb, C), lambda i: (i, 0)),
        compiler_params=pltpu.CompilerParams(
            dimension_semantics=("parallel",),
            vmem_limit_bytes=vmem_limit),
    )(x, inv_denom, c2i, frs_add, w2s, cons_add, expand, collapse)
    return out


def reference_forward(x, centers, sigmas, ns_sigma, rule_masks,
                      bn_gamma, bn_beta, weights, biases,
                      *, ampli=0.0, bn_eps=1e-5):
    """Pure-JAX mirror of the PyTorch forward (training-mode BatchNorm1d)."""
    raw_frs = jnp.exp(
        jnp.sum(-(x[:, :, None] - centers[None]) ** 2
                / (2.0 * sigmas ** 2 + ns_sigma ** 2)[None], axis=1) + ampli)
    raw_frs = raw_frs * rule_masks.reshape(1, -1)
    frs = raw_frs / (jnp.sum(raw_frs, axis=-1, keepdims=True) + 1e-10)
    mean = jnp.mean(x, axis=0, keepdims=True)
    var = jnp.mean((x - mean) ** 2, axis=0, keepdims=True)
    x_bn = (x - mean) / jnp.sqrt(var + bn_eps) * bn_gamma + bn_beta
    cons = jnp.einsum('ik,jkl->ijl', x_bn, weights) + biases[None]
    outs = cons * frs[:, :, None]
    return jnp.sum(outs, axis=1)


if __name__ == "__main__":
    B, D, R, C = 8, 16, 8, 4   # batch, in_dim, n_rules, n_classes
    key = jax.random.PRNGKey(0)
    kx, kc, kw = jax.random.split(key, 3)

    # Deterministic synthetic parameters (shapes per NonSingletonFNN.build_model).
    x = jax.random.normal(kx, (B, D), jnp.float32)
    centers = 0.5 * jax.random.normal(kc, (D, R), jnp.float32)      # init_centers
    sigmas = jnp.full((D, R), 1.5, jnp.float32)                     # init_sigmas
    ns_sigma = jnp.ones((D, 1), jnp.float32)                        # init_ns_sigma = 1.0
    rule_masks = jnp.ones((1, R), jnp.float32)
    bn_gamma = jnp.ones((1, D), jnp.float32)                        # BatchNorm1d affine defaults
    bn_beta = jnp.zeros((1, D), jnp.float32)
    weights = jax.random.normal(kw, (R, D, C), jnp.float32) / jnp.sqrt(float(D))
    biases = jnp.zeros((R, C), jnp.float32)

    ref = reference_forward(x, centers, sigmas, ns_sigma, rule_masks,
                            bn_gamma, bn_beta, weights, biases, ampli=0.0)

    # f32 MXU path: approx reciprocal + Newton-Raphson refinement -> sub-1e-4 error.
    out = non_singleton_fnn_forward(x, centers, sigmas, ns_sigma, rule_masks,
                                    bn_gamma, bn_beta, weights, biases,
                                    ampli=0.0, mxu_bf16=False)
    out = jax.block_until_ready(out)
    assert out.shape == (B, C)
    assert jnp.allclose(out, ref, rtol=1e-3, atol=1e-3), (out, ref)

    # bf16 MXU operands on the consequent matmul (useful on every generation;
    # v5e's MXU is bf16-native).  The exp / normalization path stays f32.
    out_bf16 = jax.block_until_ready(
        non_singleton_fnn_forward(x, centers, sigmas, ns_sigma, rule_masks,
                                  bn_gamma, bn_beta, weights, biases,
                                  ampli=0.0, mxu_bf16=True))
    assert jnp.allclose(out_bf16, ref, rtol=2e-2, atol=2e-2), (out_bf16, ref)

    print("KERNEL_OK")
</pallas_src>

<mosaic_0001>
module attributes {stable_mosaic.version = 11 : i64} {
  func.func @_ns_fnn_kernel(%arg0: i32, %arg1: memref<8x16xf32, #tpu.memory_space<vmem>>, %arg2: memref<16x8xf32, #tpu.memory_space<vmem>>, %arg3: memref<16x8xf32, #tpu.memory_space<vmem>>, %arg4: memref<1x8xf32, #tpu.memory_space<vmem>>, %arg5: memref<16x32xf32, #tpu.memory_space<vmem>>, %arg6: memref<1x32xf32, #tpu.memory_space<vmem>>, %arg7: memref<8x32xf32, #tpu.memory_space<vmem>>, %arg8: memref<32x4xf32, #tpu.memory_space<vmem>>, %arg9: memref<8x4xf32, #tpu.memory_space<vmem>>) attributes {dimension_semantics = [#tpu.dimension_semantics<parallel>], iteration_bounds = array<i64: 1>, scalar_prefetch = 0 : i64, scratch_operands = 0 : i64, tpu.core_type = #tpu.core_type<tc>, window_params = [{transform_indices = @transform_0, window_bounds = array<i64: 8, 16>}, {pipeline_mode = #tpu.pipeline_mode<synchronous>, transform_indices = @transform_1, window_bounds = array<i64: 16, 8>}, {pipeline_mode = #tpu.pipeline_mode<synchronous>, transform_indices = @transform_2, window_bounds = array<i64: 16, 8>}, {pipeline_mode = #tpu.pipeline_mode<synchronous>, transform_indices = @transform_3, window_bounds = array<i64: 1, 8>}, {pipeline_mode = #tpu.pipeline_mode<synchronous>, transform_indices = @transform_4, window_bounds = array<i64: 16, 32>}, {pipeline_mode = #tpu.pipeline_mode<synchronous>, transform_indices = @transform_5, window_bounds = array<i64: 1, 32>}, {pipeline_mode = #tpu.pipeline_mode<synchronous>, transform_indices = @transform_6, window_bounds = array<i64: 8, 32>}, {pipeline_mode = #tpu.pipeline_mode<synchronous>, transform_indices = @transform_7, window_bounds = array<i64: 32, 4>}, {transform_indices = @transform_8, window_bounds = array<i64: 8, 4>}]} {
    %c0 = arith.constant 0 : index
    %c0_0 = arith.constant 0 : index
    %0 = vector.load %arg1[%c0, %c0_0] : memref<8x16xf32, #tpu.memory_space<vmem>>, vector<8x16xf32>
    %c0_1 = arith.constant 0 : index
    %c0_2 = arith.constant 0 : index
    %1 = vector.load %arg4[%c0_1, %c0_2] : memref<1x8xf32, #tpu.memory_space<vmem>>, vector<1x8xf32>
    %2 = arith.mulf %0, %0 : vector<8x16xf32>
    %c0_3 = arith.constant 0 : index
    %c0_4 = arith.constant 0 : index
    %3 = vector.load %arg2[%c0_3, %c0_4] : memref<16x8xf32, #tpu.memory_space<vmem>>, vector<16x8xf32>
    %cst = arith.constant dense<0.000000e+00> : vector<8x8xf32>
    %4 = tpu.matmul %2, %3, %cst {dimension_numbers = #tpu.dot_dimension_numbers<[1], [0], [0], [1], [0, 0, 1, 1], [], []>} : vector<8x16xf32>, vector<16x8xf32>, vector<8x8xf32> -> vector<8x8xf32>
    %5 = vector.broadcast %1 : vector<1x8xf32> to vector<8x8xf32>
    %6 = arith.subf %5, %4 : vector<8x8xf32>
    %c0_5 = arith.constant 0 : index
    %c0_6 = arith.constant 0 : index
    %7 = vector.load %arg3[%c0_5, %c0_6] : memref<16x8xf32, #tpu.memory_space<vmem>>, vector<16x8xf32>
    %cst_7 = arith.constant dense<0.000000e+00> : vector<8x8xf32>
    %8 = tpu.matmul %0, %7, %cst_7 {dimension_numbers = #tpu.dot_dimension_numbers<[1], [0], [0], [1], [0, 0, 1, 1], [], []>} : vector<8x16xf32>, vector<16x8xf32>, vector<8x8xf32> -> vector<8x8xf32>
    %9 = arith.addf %6, %8 : vector<8x8xf32>
    %10 = math.exp %9 : vector<8x8xf32>
    %cst_8 = arith.constant dense<0.000000e+00> : vector<8xf32>
    %11 = vector.multi_reduction <add>, %10, %cst_8 [1] : vector<8x8xf32> to vector<8xf32>
    %12 = vector.shape_cast %11 : vector<8xf32> to vector<8x1xf32>
    %cst_9 = arith.constant 1.000000e-10 : f32
    %13 = vector.broadcast %cst_9 : f32 to vector<8x1xf32>
    %14 = arith.addf %12, %13 : vector<8x1xf32>
    %15 = tpu.reciprocal %14 {approx = true} : vector<8x1xf32> -> vector<8x1xf32>
    %16 = arith.mulf %14, %15 : vector<8x1xf32>
    %cst_10 = arith.constant 2.000000e+00 : f32
    %17 = vector.broadcast %cst_10 : f32 to vector<8x1xf32>
    %18 = arith.subf %17, %16 : vector<8x1xf32>
    %19 = arith.mulf %15, %18 : vector<8x1xf32>
    %20 = vector.broadcast %19 : vector<8x1xf32> to vector<8x8xf32>
    %21 = arith.mulf %10, %20 : vector<8x8xf32>
    %c0_11 = arith.constant 0 : index
    %c0_12 = arith.constant 0 : index
    %22 = vector.load %arg5[%c0_11, %c0_12] : memref<16x32xf32, #tpu.memory_space<vmem>>, vector<16x32xf32>
    %cst_13 = arith.constant dense<0.000000e+00> : vector<8x32xf32>
    %23 = tpu.matmul %0, %22, %cst_13 {dimension_numbers = #tpu.dot_dimension_numbers<[1], [0], [0], [1], [0, 0, 1, 1], [], []>} : vector<8x16xf32>, vector<16x32xf32>, vector<8x32xf32> -> vector<8x32xf32>
    %c0_14 = arith.constant 0 : index
    %c0_15 = arith.constant 0 : index
    %24 = vector.load %arg6[%c0_14, %c0_15] : memref<1x32xf32, #tpu.memory_space<vmem>>, vector<1x32xf32>
    %25 = vector.broadcast %24 : vector<1x32xf32> to vector<8x32xf32>
    %26 = arith.addf %23, %25 : vector<8x32xf32>
    %c0_16 = arith.constant 0 : index
    %c0_17 = arith.constant 0 : index
    %27 = vector.load %arg7[%c0_16, %c0_17] : memref<8x32xf32, #tpu.memory_space<vmem>>, vector<8x32xf32>
    %cst_18 = arith.constant dense<0.000000e+00> : vector<8x32xf32>
    %28 = tpu.matmul %21, %27, %cst_18 {dimension_numbers = #tpu.dot_dimension_numbers<[1], [0], [0], [1], [0, 0, 1, 1], [], []>} : vector<8x8xf32>, vector<8x32xf32>, vector<8x32xf32> -> vector<8x32xf32>
    %29 = arith.mulf %28, %26 : vector<8x32xf32>
    %c0_19 = arith.constant 0 : index
    %c0_20 = arith.constant 0 : index
    %30 = vector.load %arg8[%c0_19, %c0_20] : memref<32x4xf32, #tpu.memory_space<vmem>>, vector<32x4xf32>
    %cst_21 = arith.constant dense<0.000000e+00> : vector<8x4xf32>
    %31 = tpu.matmul %29, %30, %cst_21 {dimension_numbers = #tpu.dot_dimension_numbers<[1], [0], [0], [1], [0, 0, 1, 1], [], []>} : vector<8x32xf32>, vector<32x4xf32>, vector<8x4xf32> -> vector<8x4xf32>
    %c0_22 = arith.constant 0 : index
    %c0_23 = arith.constant 0 : index
    %32 = vector.load %arg9[%c0_22, %c0_23] : memref<8x4xf32, #tpu.memory_space<vmem>>, vector<8x4xf32>
    tpu.vector_store %arg9[%c0_22, %c0_23], %31 {strides = array<i32>} : memref<8x4xf32, #tpu.memory_space<vmem>>, vector<8x4xf32>,
    return
  }
  func.func @transform_0(%arg0: i32) -> (i32, i32) {
    %c0_i32 = arith.constant 0 : i32
    %c0_i32_0 = arith.constant 0 : i32
    return %arg0, %c0_i32 : i32, i32
  }
  func.func @transform_1(%arg0: i32) -> (i32, i32) {
    %c0_i32 = arith.constant 0 : i32
    %c0_i32_0 = arith.constant 0 : i32
    %c0_i32_1 = arith.constant 0 : i32
    return %c0_i32, %c0_i32_0 : i32, i32
  }
  func.func @transform_2(%arg0: i32) -> (i32, i32) {
    %c0_i32 = arith.constant 0 : i32
    %c0_i32_0 = arith.constant 0 : i32
    %c0_i32_1 = arith.constant 0 : i32
    return %c0_i32, %c0_i32_0 : i32, i32
  }
  func.func @transform_3(%arg0: i32) -> (i32, i32) {
    %c0_i32 = arith.constant 0 : i32
    %c0_i32_0 = arith.constant 0 : i32
    %c0_i32_1 = arith.constant 0 : i32
    return %c0_i32, %c0_i32_0 : i32, i32
  }
  func.func @transform_4(%arg0: i32) -> (i32, i32) {
    %c0_i32 = arith.constant 0 : i32
    %c0_i32_0 = arith.constant 0 : i32
    %c0_i32_1 = arith.constant 0 : i32
    return %c0_i32, %c0_i32_0 : i32, i32
  }
  func.func @transform_5(%arg0: i32) -> (i32, i32) {
    %c0_i32 = arith.constant 0 : i32
    %c0_i32_0 = arith.constant 0 : i32
    %c0_i32_1 = arith.constant 0 : i32
    return %c0_i32, %c0_i32_0 : i32, i32
  }
  func.func @transform_6(%arg0: i32) -> (i32, i32) {
    %c0_i32 = arith.constant 0 : i32
    %c0_i32_0 = arith.constant 0 : i32
    %c0_i32_1 = arith.constant 0 : i32
    return %c0_i32, %c0_i32_0 : i32, i32
  }
  func.func @transform_7(%arg0: i32) -> (i32, i32) {
    %c0_i32 = arith.constant 0 : i32
    %c0_i32_0 = arith.constant 0 : i32
    %c0_i32_1 = arith.constant 0 : i32
    return %c0_i32, %c0_i32_0 : i32, i32
  }
  func.func @transform_8(%arg0: i32) -> (i32, i32) {
    %c0_i32 = arith.constant 0 : i32
    %c0_i32_0 = arith.constant 0 : i32
    return %arg0, %c0_i32 : i32, i32
  }
}

</mosaic_0001>

<bundles_post_ra>
// kernel: tpu_custom_call.1
= control target key start
LH: loop header
LB: loop body
LE: loop exit
PB: predicated region body
PF: predicated region fallthrough
CT: control target
= control target key end

     0   :  { %v507_v0 = vmov 0.0   ;;  %vm508_vm0 = vmmov 0   ;;  %vm34_vm1 = vcmask 130048   ;;  %vm193_vm2 = vcmask 64512   ;;  %s625_s1 = inlined_call_operand.vmem [shape: f32[16,8], index: 1, kind: input, shape index: {}]   ;;  %s626_s0 = inlined_call_operand.vmem [shape: f32[8,16], index: 0, kind: input, shape index: {}]   ;;  %s627_s2 = inlined_call_operand.vmem [shape: f32[16,8], index: 2, kind: input, shape index: {}]   ;;  %s628_s3 = inlined_call_operand.vmem [shape: f32[1,8], index: 3, kind: input, shape index: {}]   ;;  %s629_s4 = inlined_call_operand.vmem [shape: f32[16,32], index: 4, kind: input, shape index: {}]   ;;  %s630_s6 = inlined_call_operand.vmem [shape: f32[8,32], index: 6, kind: input, shape index: {}]   ;;  %s631_s7 = inlined_call_operand.vmem [shape: f32[32,4], index: 7, kind: input, shape index: {}]   ;;  %s632_s5 = inlined_call_operand.vmem [shape: f32[1,32], index: 5, kind: input, shape index: {}]   ;;  %s633_s8 = inlined_call_operand.vmem [shape: f32[8,4], index: 8, kind: output, shape index: {}]  }
   0x1   :  { %464 = vmatprep.subr.mxu1 %v507_v0  ;;  %v33_v1 = vld [vmem:[%s625_s1 + $0x8] sm:$0xff]  ;;  %v32_v2 = vld [vmem:[%s625_s1] sm:$0xff]  ;;  %468 = vmatprep.mubr.msk.f32.mxu1 %vm508_vm0, %v507_v0  ;;  %v360_v20 = vld [vmem:[%s631_s7 + $0x18] sm:$0xff]  ;;  %vm361_vm3 = vcmask 261120   ;;  %vm435_vm4 = vcmask 31744  }
   0x2   :  { %v29_v3 = vld [vmem:[%s626_s0] sm:$0xff]  ;;  %465 = vmatpush3.msra.mxu1 %v33_v1  ;;  %478 = vmatprep.subr.mxu0 %v507_v0  ;;  %v116_v5 = vld [vmem:[%s627_s2 + $0x8] sm:$0xff]  ;;  %v359_v21 = vld [vmem:[%s631_s7 + $0x10] sm:$0xff] }
   0x3   :  { %v31_v4 = vmul.f32 %v29_v3, %v29_v3  ;;  %466 = vmatprep.subr.mxu1 %v507_v0  ;;  %482 = vmatprep.mubr.msk.f32.mxu0 %vm508_vm0, %v507_v0  ;;  %v115_v6 = vld [vmem:[%s627_s2] sm:$0xff]  ;;  %v204_v17 = vld [vmem:[%s629_s4 + $0x8] sm:$0xff] }
   0x4   :  { %467 = vmatpush3.msra.mxu1 %v32_v2  ;;  %v442_v7 = vld [vmem:[%s628_s3] ss:$0 sm:$0xff]  ;;  %479 = vmatpush3.msra.mxu0 %v204_v17  ;;  %v358_v31 = vld [vmem:[%s631_s7 + $0x8] sm:$0xff] }
   0x5   :  { %469 = vmatmul.mubr.msk.f32.vlgmr.msra.gmra.mxu1 %vm34_vm1, %v31_v4  ;;  %471 = vmatprep.subr.mxu1 %v507_v0  ;;  %v203_v18 = vld [vmem:[%s629_s4] sm:$0xff] }
   0x6   :  { %472 = vmatpush3.msra.mxu1 %v116_v5  ;;  %475 = vmatprep.mubr.msk.f32.mxu1 %vm508_vm0, %v507_v0  ;;  %v282_v19 = vld [vmem:[%s630_s6] sm:$0xff] }
   0x7   :  { %473 = vmatprep.subr.mxu1 %v507_v0  ;;  %480 = vmatprep.subr.mxu0 %v507_v0  ;;  %v357_v32 = vld [vmem:[%s631_s7] sm:$0xff] }
   0x8   :  { %474 = vmatpush3.msra.mxu1 %v115_v6  ;;  %481 = vmatpush3.msra.mxu0 %v203_v18  ;;  %v444_v33 = vld [vmem:[%s632_s5] ss:$0 sm:$0xff] }
   0x9   :  { %476 = vmatmul.mubr.msk.f32.vlgmr.msra.gmra.mxu1 %vm34_vm1, %v29_v3  ;;  %485 = vmatprep.subr.mxu1 %v507_v0 }
   0xa   :  { %487 = vmatprep.mubr.msk.f32.mxu1 %vm508_vm0, %v507_v0  ;;  %483 = vmatmul.mubr.msk.f32.vlgmr.msra.gmra.mxu0 %vm34_vm1, %v29_v3 }
   0xb   :  { %490 = vmatprep.subr.mxu0 %v507_v0  ;;  %498 = vmatprep.mubr.msk.f32.mxu0 %vm508_vm0, %v507_v0 }
   0xc   :  { %486 = vmatpush3.msra.mxu1 %v282_v19  ;;  %491 = vmatpush3.msra.mxu0 %v360_v20 }
   0xd   :  { %492 = vmatprep.subr.mxu0 %v507_v0 }
   0xe   :  { %493 = vmatpush3.msra.mxu0 %v359_v21 }
   0xf   :  { %494 = vmatprep.subr.mxu0 %v507_v0 }
  0x10   :  { %495 = vmatpush3.msra.mxu0 %v358_v31 }
  0x11   :  { %496 = vmatprep.subr.mxu0 %v507_v0 }
  0x12   :  { %497 = vmatpush3.msra.mxu0 %v357_v32 }
  0xc5   :  { %v104_v8 = vpop.f32.mrf.mxu1 }
  0xc6   :  { %v114_v10 = vsub.f32 %v442_v7, %v104_v8 }
  0xc7   :  { %v470_v9 = vpop.f32.mrf.mxu1 }
  0xc9   :  { %v186_v11 = vpop.f32.mrf.mxu1 }
  0xca   :  { %v190_v12 = vadd.f32 %v186_v11, %v114_v10  ;;  %v278_v29 = vpop.f32.mrf.mxu0 }
  0xcb   :  { %v477_v13 = vpop.f32.mrf.mxu1  ;;  %v279_v34 = vadd.f32 %v444_v33, %v278_v29 }
  0xcc   :  { %v191_v14 = vmul.f32 1.442695, %v190_v12  ;;  %v484_v30 = vpop.f32.mrf.mxu0 }
  0xce   :  { %503 = vpow2.f32 %v191_v14 }
  0xdb   :  { %v504_v15 = vpop.eup %503 }
  0xdc   :  { %v194_v16 = vsel %vm193_vm2, %v504_v15, 0.0 }
  0xdd   :  { %195 = vadd.xlane.f32.xlu0 %v194_v16 }
 0x166   :  { %v196_v22 = vpop.xlane.xlu0 %195 }
 0x167   :  { %v197_v23 = vadd.f32 1e-10, %v196_v22 }
 0x169   :  { %505 = vrcp.f32 %v197_v23 }
 0x176   :  { %v506_v24 = vpop.eup %505 }
 0x177   :  { %v199_v25 = vmul.f32 %v506_v24, %v197_v23 }
 0x179   :  { %v200_v26 = vsub.f32 2.0, %v199_v25 }
 0x17b   :  { %v201_v27 = vmul.f32 %v506_v24, %v200_v26 }
 0x17d   :  { %v202_v28 = vmul.f32 %v504_v15, %v201_v27 }
 0x17f   :  { %488 = vmatmul.mubr.msk.f32.vlgmr.msra.gmra.mxu1 %vm193_vm2, %v202_v28 }
 0x23f   :  { %v352_v35 = vpop.f32.mrf.mxu1 }
 0x240   :  { %v356_v36 = vmul.f32 %v352_v35, %v279_v34 }
 0x241   :  { %v489_v37 = vpop.f32.mrf.mxu1 }
 0x242   :  { %499 = vmatmul.mubr.msk.f32.vlgmr.msra.gmra.mxu0 %vm361_vm3, %v356_v36 }
 0x302   :  { %v431_v38 = vpop.f32.mrf.mxu0 }
 0x303   :  { %436 = vst.msk [vmem:[%s633_s8] sm:$0xff] %vm435_vm4, %v431_v38 }
 0x304   :  { %v500_v39 = vpop.f32.mrf.mxu0 }

</bundles_post_ra>
